<compile_context>
chip_gen: v6e
topology: v6e:2x2x1
jax: 0.10.0
libtpu: 0.0.40
codegen_flags: <defaults>
</compile_context>

<pallas_src>
import functools

import jax
import jax.numpy as jnp
from jax.experimental import pallas as pl
from jax.experimental.pallas import tpu as pltpu

# Layer sizes (from the PyTorch module).
D_IN, H1, H2, D_OUT = 4, 3, 5, 2

# Static offsets into the packed parameter vector.
# Weights stored PyTorch-style row-major: w[j, i] = weight of output j, input i.
OFF_W1 = 0
OFF_B1 = OFF_W1 + H1 * D_IN          # 12
OFF_W2 = OFF_B1 + H1                 # 15
OFF_B2 = OFF_W2 + H2 * H1            # 30
OFF_W3 = OFF_B2 + H2                 # 35
OFF_B3 = OFF_W3 + D_OUT * H2         # 45
N_PARAMS = OFF_B3 + D_OUT            # 47

LANE = 128
SUBLANE = 8
SUBTILE = SUBLANE * LANE             # 1024 samples = one dense (8,128) f32 vreg
# 256K samples/tile -> (4+2)*4*256K = 6 MiB/step, ~12 MiB double-buffered:
# fits v5e's 16 MiB scoped default and leaves plenty of headroom on v6e/v7x.
TILE_B_DEFAULT = 256 * SUBTILE       # 262144


def _dense_rows(p_ref, rows, w_off, b_off, n_in, n_out, relu):
    """One Linear layer as unrolled scalar*slab FMAs on the VPU.

    rows: python list of n_in arrays, each (rows_tile, 128).
    Returns a python list of n_out arrays, each (rows_tile, 128).
    """
    outs = []
    for j in range(n_out):
        acc = rows[0] * p_ref[w_off + j * n_in]
        for i in range(1, n_in):
            acc = acc + rows[i] * p_ref[w_off + j * n_in + i]
        acc = acc + p_ref[b_off + j]
        if relu:
            acc = jnp.maximum(acc, 0.0)
        outs.append(acc)
    return outs


def mlp_kernel(p_ref, x_ref, o_ref):
    # p_ref: (N_PARAMS,) f32 in SMEM (scalar-prefetched packed weights+biases)
    # x_ref: (D_IN,  rows_tile, 128) f32 in VMEM  -- batch dense in sublane+lane
    # o_ref: (D_OUT, rows_tile, 128) f32 in VMEM
    rows = [x_ref[i] for i in range(D_IN)]                    # (rows_tile, 128) each
    h1 = _dense_rows(p_ref, rows, OFF_W1, OFF_B1, D_IN, H1, relu=True)
    h2 = _dense_rows(p_ref, h1, OFF_W2, OFF_B2, H1, H2, relu=True)
    for j in range(D_OUT):                                    # direct per-row stores
        acc = h2[0] * p_ref[OFF_W3 + j * H2]
        for i in range(1, H2):
            acc = acc + h2[i] * p_ref[OFF_W3 + j * H2 + i]
        o_ref[j] = acc + p_ref[OFF_B3 + j]


def _round_up(n, m):
    return pl.cdiv(n, m) * m


def pack_params(params):
    """Flatten (w1, b1, w2, b2, w3, b3) (PyTorch layout) into one f32 vector."""
    return jnp.concatenate([p.reshape(-1).astype(jnp.float32) for p in params])


def _pick_tile(B, tile_b):
    """Adaptive batch tile: multiple of 1024, padding <= 1 tile, >=2 steps if possible."""
    tb = min(int(tile_b), _round_up(B, SUBTILE))
    tb = max(SUBTILE, (tb // SUBTILE) * SUBTILE)              # enforce % 1024 == 0
    if B >= 2 * SUBTILE and _round_up(B, tb) // tb < 2:
        # Guarantee >= 2 grid steps so v7x's two TensorCores both get work.
        tb = _round_up(pl.cdiv(B, 2), SUBTILE)
    return tb


def _mlp_feature_major(x_fm, p_flat, tile_b):
    """Core kernel call. x_fm: (D_IN, B) f32. Returns (D_OUT, B) f32."""
    B = x_fm.shape[1]
    tb = _pick_tile(B, tile_b)
    Bp = _round_up(B, tb)
    rows_total, rows_tile = Bp // LANE, tb // LANE

    if Bp != B:
        x_fm = jnp.pad(x_fm, ((0, 0), (0, Bp - B)))
    x3 = x_fm.reshape(D_IN, rows_total, LANE)

    out3 = pl.pallas_call(
        mlp_kernel,
        out_shape=jax.ShapeDtypeStruct((D_OUT, rows_total, LANE), jnp.float32),
        grid_spec=pltpu.PrefetchScalarGridSpec(
            num_scalar_prefetch=1,
            grid=(Bp // tb,),
            in_specs=[pl.BlockSpec((D_IN, rows_tile, LANE), lambda i, p: (0, i, 0))],
            out_specs=pl.BlockSpec((D_OUT, rows_tile, LANE), lambda i, p: (0, i, 0)),
        ),
        compiler_params=pltpu.CompilerParams(
            dimension_semantics=("parallel",),
            vmem_limit_bytes=32 * 1024 * 1024,
        ),
    )(p_flat, x3)

    return out3.reshape(D_OUT, Bp)[:, :B]


@functools.partial(jax.jit, static_argnames=("tile_b",))
def net_forward(x, params, *, tile_b=TILE_B_DEFAULT):
    """PyTorch convention: x (B, 4) f32 -> (B, 2) f32."""
    x_fm = x.astype(jnp.float32).T
    p_flat = pack_params(params)
    return _mlp_feature_major(x_fm, p_flat, tile_b).T


@functools.partial(jax.jit, static_argnames=("tile_b",))
def net_forward_feature_major(x_fm, params, *, tile_b=TILE_B_DEFAULT):
    """Feature-major path: x_fm (4, B) -> (2, B). Skips the wrapper transposes."""
    p_flat = pack_params(params)
    return _mlp_feature_major(x_fm.astype(jnp.float32), p_flat, tile_b)


def init_params(key):
    """Deterministic init mirroring nn.Linear's U(-1/sqrt(fan_in), 1/sqrt(fan_in)).

    Weights kept in PyTorch layout: (out_features, in_features); biases (out,).
    """
    dims = [(D_IN, H1), (H1, H2), (H2, D_OUT)]
    params = []
    for i, (fan_in, fan_out) in enumerate(dims):
        kw, kb = jax.random.split(jax.random.fold_in(key, i))
        bound = 1.0 / jnp.sqrt(fan_in)
        w = jax.random.uniform(kw, (fan_out, fan_in), jnp.float32, -bound, bound)
        b = jax.random.uniform(kb, (fan_out,), jnp.float32, -bound, bound)
        params.extend([w, b])
    return tuple(params)


def reference_forward(x, params):
    w1, b1, w2, b2, w3, b3 = params
    h1 = jnp.maximum(x @ w1.T + b1, 0.0)
    h2 = jnp.maximum(h1 @ w2.T + b2, 0.0)
    return h2 @ w3.T + b3


if __name__ == "__main__":
    key = jax.random.PRNGKey(0)
    k_x, k_p, k_x2 = jax.random.split(key, 3)
    params = init_params(k_p)

    # Small batch, PyTorch (B, in_features) convention (single grid step).
    B = 8
    x = jax.random.normal(k_x, (B, D_IN), jnp.float32)
    out = jax.block_until_ready(net_forward(x, params))
    ref = reference_forward(x, params)
    assert out.shape == (B, D_OUT), out.shape
    assert jnp.allclose(out, ref, atol=1e-5, rtol=1e-5), "mismatch vs reference (row-major)"

    # Larger feature-major batch: exercises padding + a 2-step grid.
    B2 = 2500
    x2_fm = jax.random.normal(k_x2, (D_IN, B2), jnp.float32)
    out2 = jax.block_until_ready(net_forward_feature_major(x2_fm, params))
    ref2 = reference_forward(x2_fm.T, params).T
    assert out2.shape == (D_OUT, B2), out2.shape
    assert jnp.allclose(out2, ref2, atol=1e-5, rtol=1e-5), "mismatch vs reference (feature-major)"

    print("KERNEL_OK")
</pallas_src>

<mosaic_0001>
module attributes {stable_mosaic.version = 11 : i64} {
  func.func @mlp_kernel(%arg0: i32, %arg1: memref<47xf32, #tpu.memory_space<smem>>, %arg2: memref<4x8x128xf32, #tpu.memory_space<vmem>>, %arg3: memref<2x8x128xf32, #tpu.memory_space<vmem>>) attributes {dimension_semantics = [#tpu.dimension_semantics<parallel>], iteration_bounds = array<i64: 1>, scalar_prefetch = 1 : i64, scratch_operands = 0 : i64, tpu.core_type = #tpu.core_type<tc>, window_params = [{transform_indices = @transform_0, window_bounds = array<i64: 4, 8, 128>}, {transform_indices = @transform_1, window_bounds = array<i64: 2, 8, 128>}]} {
    %c0 = arith.constant 0 : index
    %c0_0 = arith.constant 0 : index
    %c0_1 = arith.constant 0 : index
    %0 = vector.load %arg2[%c0, %c0_0, %c0_1] : memref<4x8x128xf32, #tpu.memory_space<vmem>>, vector<1x8x128xf32>
    %1 = vector.shape_cast %0 : vector<1x8x128xf32> to vector<8x128xf32>
    %c1 = arith.constant 1 : index
    %c0_2 = arith.constant 0 : index
    %c0_3 = arith.constant 0 : index
    %2 = vector.load %arg2[%c1, %c0_2, %c0_3] : memref<4x8x128xf32, #tpu.memory_space<vmem>>, vector<1x8x128xf32>
    %3 = vector.shape_cast %2 : vector<1x8x128xf32> to vector<8x128xf32>
    %c2 = arith.constant 2 : index
    %c0_4 = arith.constant 0 : index
    %c0_5 = arith.constant 0 : index
    %4 = vector.load %arg2[%c2, %c0_4, %c0_5] : memref<4x8x128xf32, #tpu.memory_space<vmem>>, vector<1x8x128xf32>
    %5 = vector.shape_cast %4 : vector<1x8x128xf32> to vector<8x128xf32>
    %c3 = arith.constant 3 : index
    %c0_6 = arith.constant 0 : index
    %c0_7 = arith.constant 0 : index
    %6 = vector.load %arg2[%c3, %c0_6, %c0_7] : memref<4x8x128xf32, #tpu.memory_space<vmem>>, vector<1x8x128xf32>
    %7 = vector.shape_cast %6 : vector<1x8x128xf32> to vector<8x128xf32>
    %c0_8 = arith.constant 0 : index
    %8 = memref.load %arg1[%c0_8] : memref<47xf32, #tpu.memory_space<smem>>
    %9 = vector.broadcast %8 : f32 to vector<8x128xf32>
    %10 = arith.mulf %1, %9 : vector<8x128xf32>
    %c1_9 = arith.constant 1 : index
    %11 = memref.load %arg1[%c1_9] : memref<47xf32, #tpu.memory_space<smem>>
    %12 = vector.broadcast %11 : f32 to vector<8x128xf32>
    %13 = arith.mulf %3, %12 : vector<8x128xf32>
    %14 = arith.addf %10, %13 : vector<8x128xf32>
    %c2_10 = arith.constant 2 : index
    %15 = memref.load %arg1[%c2_10] : memref<47xf32, #tpu.memory_space<smem>>
    %16 = vector.broadcast %15 : f32 to vector<8x128xf32>
    %17 = arith.mulf %5, %16 : vector<8x128xf32>
    %18 = arith.addf %14, %17 : vector<8x128xf32>
    %c3_11 = arith.constant 3 : index
    %19 = memref.load %arg1[%c3_11] : memref<47xf32, #tpu.memory_space<smem>>
    %20 = vector.broadcast %19 : f32 to vector<8x128xf32>
    %21 = arith.mulf %7, %20 : vector<8x128xf32>
    %22 = arith.addf %18, %21 : vector<8x128xf32>
    %c12 = arith.constant 12 : index
    %23 = memref.load %arg1[%c12] : memref<47xf32, #tpu.memory_space<smem>>
    %24 = vector.broadcast %23 : f32 to vector<8x128xf32>
    %25 = arith.addf %22, %24 : vector<8x128xf32>
    %cst = arith.constant 0.000000e+00 : f32
    %26 = vector.broadcast %cst : f32 to vector<8x128xf32>
    %27 = arith.maximumf %25, %26 : vector<8x128xf32>
    %c4 = arith.constant 4 : index
    %28 = memref.load %arg1[%c4] : memref<47xf32, #tpu.memory_space<smem>>
    %29 = vector.broadcast %28 : f32 to vector<8x128xf32>
    %30 = arith.mulf %1, %29 : vector<8x128xf32>
    %c5 = arith.constant 5 : index
    %31 = memref.load %arg1[%c5] : memref<47xf32, #tpu.memory_space<smem>>
    %32 = vector.broadcast %31 : f32 to vector<8x128xf32>
    %33 = arith.mulf %3, %32 : vector<8x128xf32>
    %34 = arith.addf %30, %33 : vector<8x128xf32>
    %c6 = arith.constant 6 : index
    %35 = memref.load %arg1[%c6] : memref<47xf32, #tpu.memory_space<smem>>
    %36 = vector.broadcast %35 : f32 to vector<8x128xf32>
    %37 = arith.mulf %5, %36 : vector<8x128xf32>
    %38 = arith.addf %34, %37 : vector<8x128xf32>
    %c7 = arith.constant 7 : index
    %39 = memref.load %arg1[%c7] : memref<47xf32, #tpu.memory_space<smem>>
    %40 = vector.broadcast %39 : f32 to vector<8x128xf32>
    %41 = arith.mulf %7, %40 : vector<8x128xf32>
    %42 = arith.addf %38, %41 : vector<8x128xf32>
    %c13 = arith.constant 13 : index
    %43 = memref.load %arg1[%c13] : memref<47xf32, #tpu.memory_space<smem>>
    %44 = vector.broadcast %43 : f32 to vector<8x128xf32>
    %45 = arith.addf %42, %44 : vector<8x128xf32>
    %cst_12 = arith.constant 0.000000e+00 : f32
    %46 = vector.broadcast %cst_12 : f32 to vector<8x128xf32>
    %47 = arith.maximumf %45, %46 : vector<8x128xf32>
    %c8 = arith.constant 8 : index
    %48 = memref.load %arg1[%c8] : memref<47xf32, #tpu.memory_space<smem>>
    %49 = vector.broadcast %48 : f32 to vector<8x128xf32>
    %50 = arith.mulf %1, %49 : vector<8x128xf32>
    %c9 = arith.constant 9 : index
    %51 = memref.load %arg1[%c9] : memref<47xf32, #tpu.memory_space<smem>>
    %52 = vector.broadcast %51 : f32 to vector<8x128xf32>
    %53 = arith.mulf %3, %52 : vector<8x128xf32>
    %54 = arith.addf %50, %53 : vector<8x128xf32>
    %c10 = arith.constant 10 : index
    %55 = memref.load %arg1[%c10] : memref<47xf32, #tpu.memory_space<smem>>
    %56 = vector.broadcast %55 : f32 to vector<8x128xf32>
    %57 = arith.mulf %5, %56 : vector<8x128xf32>
    %58 = arith.addf %54, %57 : vector<8x128xf32>
    %c11 = arith.constant 11 : index
    %59 = memref.load %arg1[%c11] : memref<47xf32, #tpu.memory_space<smem>>
    %60 = vector.broadcast %59 : f32 to vector<8x128xf32>
    %61 = arith.mulf %7, %60 : vector<8x128xf32>
    %62 = arith.addf %58, %61 : vector<8x128xf32>
    %c14 = arith.constant 14 : index
    %63 = memref.load %arg1[%c14] : memref<47xf32, #tpu.memory_space<smem>>
    %64 = vector.broadcast %63 : f32 to vector<8x128xf32>
    %65 = arith.addf %62, %64 : vector<8x128xf32>
    %cst_13 = arith.constant 0.000000e+00 : f32
    %66 = vector.broadcast %cst_13 : f32 to vector<8x128xf32>
    %67 = arith.maximumf %65, %66 : vector<8x128xf32>
    %c15 = arith.constant 15 : index
    %68 = memref.load %arg1[%c15] : memref<47xf32, #tpu.memory_space<smem>>
    %69 = vector.broadcast %68 : f32 to vector<8x128xf32>
    %70 = arith.mulf %27, %69 : vector<8x128xf32>
    %c16 = arith.constant 16 : index
    %71 = memref.load %arg1[%c16] : memref<47xf32, #tpu.memory_space<smem>>
    %72 = vector.broadcast %71 : f32 to vector<8x128xf32>
    %73 = arith.mulf %47, %72 : vector<8x128xf32>
    %74 = arith.addf %70, %73 : vector<8x128xf32>
    %c17 = arith.constant 17 : index
    %75 = memref.load %arg1[%c17] : memref<47xf32, #tpu.memory_space<smem>>
    %76 = vector.broadcast %75 : f32 to vector<8x128xf32>
    %77 = arith.mulf %67, %76 : vector<8x128xf32>
    %78 = arith.addf %74, %77 : vector<8x128xf32>
    %c30 = arith.constant 30 : index
    %79 = memref.load %arg1[%c30] : memref<47xf32, #tpu.memory_space<smem>>
    %80 = vector.broadcast %79 : f32 to vector<8x128xf32>
    %81 = arith.addf %78, %80 : vector<8x128xf32>
    %cst_14 = arith.constant 0.000000e+00 : f32
    %82 = vector.broadcast %cst_14 : f32 to vector<8x128xf32>
    %83 = arith.maximumf %81, %82 : vector<8x128xf32>
    %c18 = arith.constant 18 : index
    %84 = memref.load %arg1[%c18] : memref<47xf32, #tpu.memory_space<smem>>
    %85 = vector.broadcast %84 : f32 to vector<8x128xf32>
    %86 = arith.mulf %27, %85 : vector<8x128xf32>
    %c19 = arith.constant 19 : index
    %87 = memref.load %arg1[%c19] : memref<47xf32, #tpu.memory_space<smem>>
    %88 = vector.broadcast %87 : f32 to vector<8x128xf32>
    %89 = arith.mulf %47, %88 : vector<8x128xf32>
    %90 = arith.addf %86, %89 : vector<8x128xf32>
    %c20 = arith.constant 20 : index
    %91 = memref.load %arg1[%c20] : memref<47xf32, #tpu.memory_space<smem>>
    %92 = vector.broadcast %91 : f32 to vector<8x128xf32>
    %93 = arith.mulf %67, %92 : vector<8x128xf32>
    %94 = arith.addf %90, %93 : vector<8x128xf32>
    %c31 = arith.constant 31 : index
    %95 = memref.load %arg1[%c31] : memref<47xf32, #tpu.memory_space<smem>>
    %96 = vector.broadcast %95 : f32 to vector<8x128xf32>
    %97 = arith.addf %94, %96 : vector<8x128xf32>
    %cst_15 = arith.constant 0.000000e+00 : f32
    %98 = vector.broadcast %cst_15 : f32 to vector<8x128xf32>
    %99 = arith.maximumf %97, %98 : vector<8x128xf32>
    %c21 = arith.constant 21 : index
    %100 = memref.load %arg1[%c21] : memref<47xf32, #tpu.memory_space<smem>>
    %101 = vector.broadcast %100 : f32 to vector<8x128xf32>
    %102 = arith.mulf %27, %101 : vector<8x128xf32>
    %c22 = arith.constant 22 : index
    %103 = memref.load %arg1[%c22] : memref<47xf32, #tpu.memory_space<smem>>
    %104 = vector.broadcast %103 : f32 to vector<8x128xf32>
    %105 = arith.mulf %47, %104 : vector<8x128xf32>
    %106 = arith.addf %102, %105 : vector<8x128xf32>
    %c23 = arith.constant 23 : index
    %107 = memref.load %arg1[%c23] : memref<47xf32, #tpu.memory_space<smem>>
    %108 = vector.broadcast %107 : f32 to vector<8x128xf32>
    %109 = arith.mulf %67, %108 : vector<8x128xf32>
    %110 = arith.addf %106, %109 : vector<8x128xf32>
    %c32 = arith.constant 32 : index
    %111 = memref.load %arg1[%c32] : memref<47xf32, #tpu.memory_space<smem>>
    %112 = vector.broadcast %111 : f32 to vector<8x128xf32>
    %113 = arith.addf %110, %112 : vector<8x128xf32>
    %cst_16 = arith.constant 0.000000e+00 : f32
    %114 = vector.broadcast %cst_16 : f32 to vector<8x128xf32>
    %115 = arith.maximumf %113, %114 : vector<8x128xf32>
    %c24 = arith.constant 24 : index
    %116 = memref.load %arg1[%c24] : memref<47xf32, #tpu.memory_space<smem>>
    %117 = vector.broadcast %116 : f32 to vector<8x128xf32>
    %118 = arith.mulf %27, %117 : vector<8x128xf32>
    %c25 = arith.constant 25 : index
    %119 = memref.load %arg1[%c25] : memref<47xf32, #tpu.memory_space<smem>>
    %120 = vector.broadcast %119 : f32 to vector<8x128xf32>
    %121 = arith.mulf %47, %120 : vector<8x128xf32>
    %122 = arith.addf %118, %121 : vector<8x128xf32>
    %c26 = arith.constant 26 : index
    %123 = memref.load %arg1[%c26] : memref<47xf32, #tpu.memory_space<smem>>
    %124 = vector.broadcast %123 : f32 to vector<8x128xf32>
    %125 = arith.mulf %67, %124 : vector<8x128xf32>
    %126 = arith.addf %122, %125 : vector<8x128xf32>
    %c33 = arith.constant 33 : index
    %127 = memref.load %arg1[%c33] : memref<47xf32, #tpu.memory_space<smem>>
    %128 = vector.broadcast %127 : f32 to vector<8x128xf32>
    %129 = arith.addf %126, %128 : vector<8x128xf32>
    %cst_17 = arith.constant 0.000000e+00 : f32
    %130 = vector.broadcast %cst_17 : f32 to vector<8x128xf32>
    %131 = arith.maximumf %129, %130 : vector<8x128xf32>
    %c27 = arith.constant 27 : index
    %132 = memref.load %arg1[%c27] : memref<47xf32, #tpu.memory_space<smem>>
    %133 = vector.broadcast %132 : f32 to vector<8x128xf32>
    %134 = arith.mulf %27, %133 : vector<8x128xf32>
    %c28 = arith.constant 28 : index
    %135 = memref.load %arg1[%c28] : memref<47xf32, #tpu.memory_space<smem>>
    %136 = vector.broadcast %135 : f32 to vector<8x128xf32>
    %137 = arith.mulf %47, %136 : vector<8x128xf32>
    %138 = arith.addf %134, %137 : vector<8x128xf32>
    %c29 = arith.constant 29 : index
    %139 = memref.load %arg1[%c29] : memref<47xf32, #tpu.memory_space<smem>>
    %140 = vector.broadcast %139 : f32 to vector<8x128xf32>
    %141 = arith.mulf %67, %140 : vector<8x128xf32>
    %142 = arith.addf %138, %141 : vector<8x128xf32>
    %c34 = arith.constant 34 : index
    %143 = memref.load %arg1[%c34] : memref<47xf32, #tpu.memory_space<smem>>
    %144 = vector.broadcast %143 : f32 to vector<8x128xf32>
    %145 = arith.addf %142, %144 : vector<8x128xf32>
    %cst_18 = arith.constant 0.000000e+00 : f32
    %146 = vector.broadcast %cst_18 : f32 to vector<8x128xf32>
    %147 = arith.maximumf %145, %146 : vector<8x128xf32>
    %c35 = arith.constant 35 : index
    %148 = memref.load %arg1[%c35] : memref<47xf32, #tpu.memory_space<smem>>
    %149 = vector.broadcast %148 : f32 to vector<8x128xf32>
    %150 = arith.mulf %83, %149 : vector<8x128xf32>
    %c36 = arith.constant 36 : index
    %151 = memref.load %arg1[%c36] : memref<47xf32, #tpu.memory_space<smem>>
    %152 = vector.broadcast %151 : f32 to vector<8x128xf32>
    %153 = arith.mulf %99, %152 : vector<8x128xf32>
    %154 = arith.addf %150, %153 : vector<8x128xf32>
    %c37 = arith.constant 37 : index
    %155 = memref.load %arg1[%c37] : memref<47xf32, #tpu.memory_space<smem>>
    %156 = vector.broadcast %155 : f32 to vector<8x128xf32>
    %157 = arith.mulf %115, %156 : vector<8x128xf32>
    %158 = arith.addf %154, %157 : vector<8x128xf32>
    %c38 = arith.constant 38 : index
    %159 = memref.load %arg1[%c38] : memref<47xf32, #tpu.memory_space<smem>>
    %160 = vector.broadcast %159 : f32 to vector<8x128xf32>
    %161 = arith.mulf %131, %160 : vector<8x128xf32>
    %162 = arith.addf %158, %161 : vector<8x128xf32>
    %c39 = arith.constant 39 : index
    %163 = memref.load %arg1[%c39] : memref<47xf32, #tpu.memory_space<smem>>
    %164 = vector.broadcast %163 : f32 to vector<8x128xf32>
    %165 = arith.mulf %147, %164 : vector<8x128xf32>
    %166 = arith.addf %162, %165 : vector<8x128xf32>
    %c45 = arith.constant 45 : index
    %167 = memref.load %arg1[%c45] : memref<47xf32, #tpu.memory_space<smem>>
    %168 = vector.broadcast %167 : f32 to vector<8x128xf32>
    %169 = arith.addf %166, %168 : vector<8x128xf32>
    %c0_19 = arith.constant 0 : index
    %c0_20 = arith.constant 0 : index
    %c0_21 = arith.constant 0 : index
    %170 = vector.load %arg3[%c0_19, %c0_20, %c0_21] : memref<2x8x128xf32, #tpu.memory_space<vmem>>, vector<1x8x128xf32>
    %171 = vector.shape_cast %170 : vector<1x8x128xf32> to vector<8x128xf32>
    %172 = vector.shape_cast %169 : vector<8x128xf32> to vector<1x8x128xf32>
    tpu.vector_store %arg3[%c0_19, %c0_20, %c0_21], %172 {strides = array<i32>} : memref<2x8x128xf32, #tpu.memory_space<vmem>>, vector<1x8x128xf32>,
    %c40 = arith.constant 40 : index
    %173 = memref.load %arg1[%c40] : memref<47xf32, #tpu.memory_space<smem>>
    %174 = vector.broadcast %173 : f32 to vector<8x128xf32>
    %175 = arith.mulf %83, %174 : vector<8x128xf32>
    %c41 = arith.constant 41 : index
    %176 = memref.load %arg1[%c41] : memref<47xf32, #tpu.memory_space<smem>>
    %177 = vector.broadcast %176 : f32 to vector<8x128xf32>
    %178 = arith.mulf %99, %177 : vector<8x128xf32>
    %179 = arith.addf %175, %178 : vector<8x128xf32>
    %c42 = arith.constant 42 : index
    %180 = memref.load %arg1[%c42] : memref<47xf32, #tpu.memory_space<smem>>
    %181 = vector.broadcast %180 : f32 to vector<8x128xf32>
    %182 = arith.mulf %115, %181 : vector<8x128xf32>
    %183 = arith.addf %179, %182 : vector<8x128xf32>
    %c43 = arith.constant 43 : index
    %184 = memref.load %arg1[%c43] : memref<47xf32, #tpu.memory_space<smem>>
    %185 = vector.broadcast %184 : f32 to vector<8x128xf32>
    %186 = arith.mulf %131, %185 : vector<8x128xf32>
    %187 = arith.addf %183, %186 : vector<8x128xf32>
    %c44 = arith.constant 44 : index
    %188 = memref.load %arg1[%c44] : memref<47xf32, #tpu.memory_space<smem>>
    %189 = vector.broadcast %188 : f32 to vector<8x128xf32>
    %190 = arith.mulf %147, %189 : vector<8x128xf32>
    %191 = arith.addf %187, %190 : vector<8x128xf32>
    %c46 = arith.constant 46 : index
    %192 = memref.load %arg1[%c46] : memref<47xf32, #tpu.memory_space<smem>>
    %193 = vector.broadcast %192 : f32 to vector<8x128xf32>
    %194 = arith.addf %191, %193 : vector<8x128xf32>
    %c1_22 = arith.constant 1 : index
    %c0_23 = arith.constant 0 : index
    %c0_24 = arith.constant 0 : index
    %195 = vector.load %arg3[%c1_22, %c0_23, %c0_24] : memref<2x8x128xf32, #tpu.memory_space<vmem>>, vector<1x8x128xf32>
    %196 = vector.shape_cast %195 : vector<1x8x128xf32> to vector<8x128xf32>
    %197 = vector.shape_cast %194 : vector<8x128xf32> to vector<1x8x128xf32>
    tpu.vector_store %arg3[%c1_22, %c0_23, %c0_24], %197 {strides = array<i32>} : memref<2x8x128xf32, #tpu.memory_space<vmem>>, vector<1x8x128xf32>,
    return
  }
  func.func @transform_0(%arg0: i32, %arg1: memref<47xf32, #tpu.memory_space<smem>>) -> (i32, i32, i32) {
    %c0_i32 = arith.constant 0 : i32
    %c0_i32_0 = arith.constant 0 : i32
    %c0_i32_1 = arith.constant 0 : i32
    return %c0_i32, %arg0, %c0_i32_0 : i32, i32, i32
  }
  func.func @transform_1(%arg0: i32, %arg1: memref<47xf32, #tpu.memory_space<smem>>) -> (i32, i32, i32) {
    %c0_i32 = arith.constant 0 : i32
    %c0_i32_0 = arith.constant 0 : i32
    %c0_i32_1 = arith.constant 0 : i32
    return %c0_i32, %arg0, %c0_i32_0 : i32, i32, i32
  }
}

</mosaic_0001>

<bundles_post_ra>
// kernel: net_forward.1
= control target key start
LH: loop header
LB: loop body
LE: loop exit
PB: predicated region body
PF: predicated region fallthrough
CT: control target
= control target key end

     0   :  { %s354_s0 = inlined_call_operand.vmem [shape: f32[47], index: 0, kind: input, shape index: {}]   ;;  %s355_s1 = inlined_call_operand.vmem [shape: f32[4,8,128], index: 1, kind: input, shape index: {}]   ;;  %s356_s2 = inlined_call_operand.vmem [shape: f32[2,8,128], index: 2, kind: output, shape index: {}]  }
   0x1   :  { %s7_s11 = sshll.u32 %s354_s0, 4  ;;  %s8_s11 = int_to_ptr.vmem [resolvable:$true] %s7_s11 }
   0x2   :  { %s256_s12 = scalar_lea.vmem %s8_s11, 16  ;;  %p261_p1 = scmp.lt.s32.totalorder %s8_s11, %s8_s11 }
   0x3   :  { %p257_p0 = scmp.ne.s32.totalorder %s8_s11, %s256_s12  ;;  %p262_p2 = scmp.lt.s32.totalorder %s256_s12, %s256_s12 }
   0x5   :  { %p263_p3 = por %p262_p2, %p261_p1 }
   0x7   :  { %p264_p4 = pnand %p263_p3, %p257_p0 }
   0x9   :  { %267 = shalt.err (!%p264_p4)  }
   0xa   :  { %s270_s13 = smov [#allocation3]  }
   0xb   :  { %10 = dma.vmem_to_smem %s8_s11, 16, %s270_s13, [#allocation2] }
   0xc   :  { %268 = dma.done.wait [#allocation2], 16 }
   0xd   :  { %269 = vsyncadd [#allocation2], 4294967280 }
   0xe   :  { %12 = sfence }
   0xf   :  { %s22_s14 = sld [smem:[#allocation3]]  ;;  %v15_v0 = vld [vmem:[%s355_s1] sm:$0xff]  ;;  %v205_v1 = vld [vmem:[%s355_s1 + $0x8] sm:$0xff]  ;;  %v206_v2 = vld [vmem:[%s355_s1 + $0x10] sm:$0xff] }
  0x10   :  { %s208_s15 = sld [smem:[#allocation3 + $0x1]]  ;;  %v207_v4 = vld [vmem:[%s355_s1 + $0x18] sm:$0xff] }
  0x11   :  { %s209_s16 = sld [smem:[#allocation3 + $0x2]] }
  0x12   :  { %s210_s17 = sld [smem:[#allocation3 + $0x3]] }
  0x13   :  { %s292_s0 = sld [smem:[#allocation3 + $0xc]] }
  0x14   :  { %s212_s22 = sld [smem:[#allocation3 + $0x4]] }
  0x15   :  { %v23_v3 = vstv %s22_s14  ;;  %s213_s25 = sld [smem:[#allocation3 + $0x5]] }
  0x16   :  { %v24_v5 = vmul.f32 %v23_v3, %v15_v0  ;;  %v26_v6 = vstv %s208_s15  ;;  %s214_s28 = sld [smem:[#allocation3 + $0x6]] }
  0x17   :  { %v27_v7 = vmul.f32 %v205_v1, %v26_v6  ;;  %v30_v8 = vstv %s209_s16  ;;  %s215_s29 = sld [smem:[#allocation3 + $0x7]] }
  0x18   :  { %v31_v9 = vmul.f32 %v206_v2, %v30_v8  ;;  %v34_v10 = vstv %s210_s17  ;;  %s303_s30 = sld [smem:[#allocation3 + $0xd]] }
  0x19   :  { %v28_v11 = vadd.f32 %v27_v7, %v24_v5  ;;  %v35_v12 = vmul.f32 %v207_v4, %v34_v10  ;;  %s217_s3 = sld [smem:[#allocation3 + $0x8]]  ;;  %v38_v17 = vstv %s292_s0 }
  0x1a   :  { %v42_v13 = vstv %s212_s22  ;;  %s218_s4 = sld [smem:[#allocation3 + $0x9]] }
  0x1b   :  { %v32_v14 = vadd.f32 %v31_v9, %v28_v11  ;;  %v43_v15 = vmul.f32 %v42_v13, %v15_v0  ;;  %v45_v16 = vstv %s213_s25  ;;  %s219_s1 = sld [smem:[#allocation3 + $0xa]] }
  0x1c   :  { %v46_v18 = vmul.f32 %v205_v1, %v45_v16  ;;  %v49_v19 = vstv %s214_s28  ;;  %s220_s5 = sld [smem:[#allocation3 + $0xb]] }
  0x1d   :  { %v36_v20 = vadd.f32 %v35_v12, %v32_v14  ;;  %v50_v21 = vmul.f32 %v206_v2, %v49_v19  ;;  %v53_v22 = vstv %s215_s29  ;;  %s306_s6 = sld [smem:[#allocation3 + $0xe]] }
  0x1e   :  { %v47_v23 = vadd.f32 %v46_v18, %v43_v15  ;;  %v54_v24 = vmul.f32 %v207_v4, %v53_v22  ;;  %s222_s7 = sld [smem:[#allocation3 + $0xf]]  ;;  %v57_v30 = vstv %s303_s30 }
  0x1f   :  { %v39_v25 = vadd.f32 %v38_v17, %v36_v20  ;;  %v61_v26 = vstv %s217_s3  ;;  %s223_s8 = sld [smem:[#allocation3 + $0x10]] }
  0x20   :  { %v51_v27 = vadd.f32 %v50_v21, %v47_v23  ;;  %v62_v28 = vmul.f32 %v61_v26, %v15_v0  ;;  %v64_v29 = vstv %s218_s4  ;;  %s308_s9 = sld [smem:[#allocation3 + $0x11]] }
  0x21   :  { %v65_v31 = vmul.f32 %v205_v1, %v64_v29  ;;  %v68_v32 = vstv %s219_s1  ;;  %s311_s10 = sld [smem:[#allocation3 + $0x1e]]  ;;  %v313_v36 = vmax.f32 %v39_v25, 0.0 }
  0x22   :  { %v55_v33 = vadd.f32 %v54_v24, %v51_v27  ;;  %v69_v34 = vmul.f32 %v206_v2, %v68_v32  ;;  %v72_v35 = vstv %s220_s5  ;;  %s226_s11 = sld [smem:[#allocation3 + $0x12]] }
  0x23   :  { %v66_v37 = vadd.f32 %v65_v31, %v62_v28  ;;  %v73_v38 = vmul.f32 %v207_v4, %v72_v35  ;;  %s227_s12 = sld [smem:[#allocation3 + $0x13]]  ;;  %v76_v44 = vstv %s306_s6 }
  0x24   :  { %v58_v39 = vadd.f32 %v57_v30, %v55_v33  ;;  %v80_v40 = vstv %s222_s7  ;;  %s228_s13 = sld [smem:[#allocation3 + $0x14]] }
  0x25   :  { %v70_v41 = vadd.f32 %v69_v34, %v66_v37  ;;  %v83_v42 = vstv %s223_s8  ;;  %s315_s14 = sld [smem:[#allocation3 + $0x1f]]  ;;  %v81_v46 = vmul.f32 %v80_v40, %v313_v36 }
  0x26   :  { %v317_v43 = vmax.f32 %v58_v39, 0.0  ;;  %s230_s15 = sld [smem:[#allocation3 + $0x15]]  ;;  %v87_v52 = vstv %s308_s9 }
  0x27   :  { %v74_v45 = vadd.f32 %v73_v38, %v70_v41  ;;  %s231_s16 = sld [smem:[#allocation3 + $0x16]]  ;;  %v91_v63 = vstv %s311_s10 }
  0x28   :  { %v84_v47 = vmul.f32 %v83_v42, %v317_v43  ;;  %v95_v48 = vstv %s226_s11  ;;  %s232_s17 = sld [smem:[#allocation3 + $0x17]] }
  0x29   :  { %v77_v49 = vadd.f32 %v76_v44, %v74_v45  ;;  %v96_v50 = vmul.f32 %v95_v48, %v313_v36  ;;  %v98_v51 = vstv %s227_s12  ;;  %s323_s18 = sld [smem:[#allocation3 + $0x20]] }
  0x2a   :  { %v99_v53 = vmul.f32 %v98_v51, %v317_v43  ;;  %v102_v54 = vstv %s228_s13  ;;  %s234_s19 = sld [smem:[#allocation3 + $0x18]]  ;;  %v85_v56 = vadd.f32 %v84_v47, %v81_v46 }
  0x2b   :  { %v78_v55 = vmax.f32 %v77_v49, 0.0  ;;  %s235_s0 = sld [smem:[#allocation3 + $0x19]]  ;;  %v106_v4 = vstv %s315_s14 }
  0x2c   :  { %v100_v57 = vadd.f32 %v99_v53, %v96_v50  ;;  %v110_v58 = vstv %s230_s15  ;;  %s236_s20 = sld [smem:[#allocation3 + $0x1a]] }
  0x2d   :  { %v88_v59 = vmul.f32 %v87_v52, %v78_v55  ;;  %v103_v60 = vmul.f32 %v102_v54, %v78_v55  ;;  %v111_v61 = vmul.f32 %v110_v58, %v313_v36  ;;  %v113_v62 = vstv %s231_s16  ;;  %s328_s21 = sld [smem:[#allocation3 + $0x21]] }
  0x2e   :  { %v114_v0 = vmul.f32 %v113_v62, %v317_v43  ;;  %v117_v1 = vstv %s232_s17  ;;  %s238_s22 = sld [smem:[#allocation3 + $0x1b]] }
  0x2f   :  { %v89_v2 = vadd.f32 %v88_v59, %v85_v56  ;;  %v104_v3 = vadd.f32 %v103_v60, %v100_v57  ;;  %v118_v5 = vmul.f32 %v117_v1, %v78_v55  ;;  %s239_s23 = sld [smem:[#allocation3 + $0x1c]]  ;;  %v121_v9 = vstv %s323_s18 }
  0x30   :  { %v115_v6 = vadd.f32 %v114_v0, %v111_v61  ;;  %v125_v7 = vstv %s234_s19  ;;  %s240_s24 = sld [smem:[#allocation3 + $0x1d]] }
  0x31   :  { %v92_v8 = vadd.f32 %v91_v63, %v89_v2  ;;  %v126_v10 = vmul.f32 %v125_v7, %v313_v36  ;;  %v128_v11 = vstv %s235_s0  ;;  %s335_s25 = sld [smem:[#allocation3 + $0x22]]  ;;  %v107_v12 = vadd.f32 %v106_v4, %v104_v3 }
  0x32   :  { %v119_v13 = vadd.f32 %v118_v5, %v115_v6  ;;  %v129_v14 = vmul.f32 %v128_v11, %v317_v43  ;;  %v132_v15 = vstv %s236_s20  ;;  %s242_s26 = sld [smem:[#allocation3 + $0x23]] }
  0x33   :  { %v133_v16 = vmul.f32 %v132_v15, %v78_v55  ;;  %s243_s27 = sld [smem:[#allocation3 + $0x24]]  ;;  %v93_v20 = vmax.f32 %v92_v8, 0.0  ;;  %v136_v21 = vstv %s328_s21  ;;  %v108_v24 = vmax.f32 %v107_v12, 0.0 }
  0x34   :  { %v122_v17 = vadd.f32 %v121_v9, %v119_v13  ;;  %v130_v18 = vadd.f32 %v129_v14, %v126_v10  ;;  %v140_v19 = vstv %s238_s22  ;;  %s244_s28 = sld [smem:[#allocation3 + $0x25]] }
  0x35   :  { %v141_v22 = vmul.f32 %v140_v19, %v313_v36  ;;  %v143_v23 = vstv %s239_s23  ;;  %s245_s29 = sld [smem:[#allocation3 + $0x26]] }
  0x36   :  { %v134_v25 = vadd.f32 %v133_v16, %v130_v18  ;;  %v144_v26 = vmul.f32 %v143_v23, %v317_v43  ;;  %v147_v27 = vstv %s240_s24  ;;  %s341_s30 = sld [smem:[#allocation3 + $0x27]]  ;;  %v123_v28 = vmax.f32 %v122_v17, 0.0 }
  0x37   :  { %v148_v29 = vmul.f32 %v147_v27, %v78_v55  ;;  %s343_s3 = sld [smem:[#allocation3 + $0x2d]]  ;;  %v151_v33 = vstv %s335_s25 }
  0x38   :  { %v137_v30 = vadd.f32 %v136_v21, %v134_v25  ;;  %v145_v31 = vadd.f32 %v144_v26, %v141_v22  ;;  %v155_v32 = vstv %s242_s26  ;;  %s248_s4 = sld [smem:[#allocation3 + $0x28]] }
  0x39   :  { %v156_v34 = vmul.f32 %v155_v32, %v93_v20  ;;  %v158_v35 = vstv %s243_s27  ;;  %s249_s1 = sld [smem:[#allocation3 + $0x29]] }
  0x3a   :  { %v138_v36 = vmax.f32 %v137_v30, 0.0  ;;  %v149_v37 = vadd.f32 %v148_v29, %v145_v31  ;;  %v159_v38 = vmul.f32 %v158_v35, %v108_v24  ;;  %v162_v39 = vstv %s244_s28  ;;  %s250_s5 = sld [smem:[#allocation3 + $0x2a]] }
  0x3b   :  { %v163_v40 = vmul.f32 %v162_v39, %v123_v28  ;;  %v166_v41 = vstv %s245_s29  ;;  %s251_s6 = sld [smem:[#allocation3 + $0x2b]] }
  0x3c   :  { %v152_v42 = vadd.f32 %v151_v33, %v149_v37  ;;  %v160_v43 = vadd.f32 %v159_v38, %v156_v34  ;;  %v167_v44 = vmul.f32 %v166_v41, %v138_v36  ;;  %s252_s7 = sld [smem:[#allocation3 + $0x2c]]  ;;  %v170_v45 = vstv %s341_s30 }
  0x3d   :  { %s253_s8 = sld [smem:[#allocation3 + $0x2e]]  ;;  %v174_v55 = vstv %s343_s3 }
  0x3e   :  { %v153_v46 = vmax.f32 %v152_v42, 0.0  ;;  %v164_v47 = vadd.f32 %v163_v40, %v160_v43  ;;  %v178_v48 = vstv %s248_s4 }
  0x3f   :  { %v179_v49 = vmul.f32 %v178_v48, %v93_v20  ;;  %v181_v50 = vstv %s249_s1 }
  0x40   :  { %v168_v51 = vadd.f32 %v167_v44, %v164_v47  ;;  %v171_v52 = vmul.f32 %v170_v45, %v153_v46  ;;  %v182_v53 = vmul.f32 %v181_v50, %v108_v24  ;;  %v185_v54 = vstv %s250_s5 }
  0x41   :  { %v186_v56 = vmul.f32 %v185_v54, %v123_v28  ;;  %v189_v57 = vstv %s251_s6 }
  0x42   :  { %v172_v58 = vadd.f32 %v171_v52, %v168_v51  ;;  %v183_v59 = vadd.f32 %v182_v53, %v179_v49  ;;  %v190_v60 = vmul.f32 %v189_v57, %v138_v36  ;;  %v193_v61 = vstv %s252_s7 }
  0x43   :  { %v194_v0 = vmul.f32 %v193_v61, %v153_v46  ;;  %v197_v2 = vstv %s253_s8 }
  0x44   :  { %v175_v62 = vadd.f32 %v174_v55, %v172_v58  ;;  %v187_v63 = vadd.f32 %v186_v56, %v183_v59 }
  0x46   :  { %176 = vst [vmem:[%s356_s2] sm:$0xff] %v175_v62  ;;  %v191_v1 = vadd.f32 %v190_v60, %v187_v63 }
  0x48   :  { %v195_v3 = vadd.f32 %v194_v0, %v191_v1 }
  0x4a   :  { %v198_v4 = vadd.f32 %v197_v2, %v195_v3 }
  0x4c   :  { %254 = vst [vmem:[%s356_s2 + $0x8] sm:$0xff] %v198_v4 }

</bundles_post_ra>
